<compile_context>
chip_gen: v6e
topology: v6e:2x2x1
jax: 0.10.0
libtpu: 0.0.40
codegen_flags: <defaults>
</compile_context>

<pallas_src>
import jax
import jax.numpy as jnp
from jax.experimental import pallas as pl
from jax.experimental.pallas import tpu as pltpu


# ----------------------------------------------------------------------------
# Helpers
# ----------------------------------------------------------------------------
def _round_up(x, m):
    return (x + m - 1) // m * m


def _vmem_capacity_bytes():
    try:
        return int(pltpu.get_tpu_info().vmem_capacity_bytes)
    except Exception:
        return 64 << 20  # v7x-safe fallback


def _tile_footprint_bytes(t, cm, qp, kp, *, return_mask_pred, sem_bytes,
                          mp_bytes):
    """Double-buffered pipelined tile bytes + in-kernel intermediates +
    resident small operands."""
    per_px = cm * 2 + kp * sem_bytes + (qp * mp_bytes if return_mask_pred else 0)
    inter = qp * (4 + 2) * t + kp * 4 * t          # f32 logits/semseg, bf16 prob
    resident = kp * qp * 2 + qp * cm * 2
    return 2 * per_px * t + inter + 2 * resident


def _pick_tile_hw(hw, cm, qp, kp, *, return_mask_pred, sem_bytes, mp_bytes,
                  max_tile=8192, vmem_budget_bytes=None):
    """Pick the HW tile first; the caller rounds HW up to a multiple of it.
    Among budget-feasible multiples of 128, minimize total padded HWp
    (= ceil(HW/t)*t); among ties prefer the largest tile (fewest grid steps)."""
    if vmem_budget_bytes is None:
        cap = _vmem_capacity_bytes()
        # ~56 MiB tile budget on 128 MiB chips (v5e/v6e), ~24 MiB on v7x.
        vmem_budget_bytes = max(16 << 20, min(cap // 2 - (8 << 20), 64 << 20))
    hw128 = _round_up(hw, 128)
    t_cap = min(max_tile, hw128)
    best_t, best_hwp = 128, hw128
    t = 128
    while t <= t_cap:
        if _tile_footprint_bytes(
                t, cm, qp, kp, return_mask_pred=return_mask_pred,
                sem_bytes=sem_bytes, mp_bytes=mp_bytes) <= vmem_budget_bytes:
            hwp = pl.cdiv(hw, t) * t
            if hwp < best_hwp or (hwp == best_hwp and t > best_t):
                best_t, best_hwp = t, hwp
        t += 128
    return best_t


# ----------------------------------------------------------------------------
# Pallas kernel: one (image, HW-tile) step.
#   mask_logits = mask_embed (Qp,Cm) @ pixfeat_tile (Cm,tHW)      -> (Qp,tHW)
#   semseg_tile = cls_prob^T (Kp,Qp) @ sigmoid(mask_logits)       -> (Kp,tHW)
# All HW-invariant work (classifier, softmax, mask-embed projection) is done
# once outside the kernel, so nothing is recomputed per spatial tile.
# ----------------------------------------------------------------------------
def _pano_tile_kernel(cls_ref, me_ref, pix_ref, sem_ref, mp_ref=None):
    mask_logits = jnp.dot(me_ref[...], pix_ref[...],
                          preferred_element_type=jnp.float32)        # (Qp, tHW)
    # f32 sigmoid (portable on v5e; kernel is HBM-bound so this is not the
    # binder on v6e/v7x), then bf16 for the second MXU operand.
    mask_prob = jax.nn.sigmoid(mask_logits).astype(cls_ref.dtype)    # (Qp, tHW)
    semseg = jnp.dot(cls_ref[...], mask_prob,
                     preferred_element_type=jnp.float32)             # (Kp, tHW)
    sem_ref[...] = semseg.astype(sem_ref.dtype)
    if mp_ref is not None:
        mp_ref[...] = mask_logits.astype(mp_ref.dtype)
    # TODO(synk): fusing the downstream per-pixel class argmax into this kernel
    # (emitting only (B, HW) indices) would cut the dominant HBM write by Kx.


def pano_semantic_inference(cls_prob_t, mask_embed, pixfeat, *,
                            return_mask_pred=True, tile_hw=None,
                            compute_dtype=jnp.bfloat16,
                            semseg_dtype=jnp.bfloat16,
                            mask_pred_dtype=jnp.bfloat16):
    """cls_prob_t: (B, K, Q) class probs ("no-object" already dropped),
    mask_embed: (B, Q, Cm), pixfeat: (B, Cm, HW) with HW lane-dense last.

    Returns (semseg, mask_logits) PADDED: semseg (B, Kp, HWp) in semseg_dtype,
    mask_logits (B, Qp, HWp) in mask_pred_dtype (or None).  Padded class /
    query rows are exactly zero; no post-kernel slice copies are made."""
    B, K, Q = cls_prob_t.shape
    _, Cm, HW = pixfeat.shape

    sem_bytes = jnp.dtype(semseg_dtype).itemsize
    mp_bytes = jnp.dtype(mask_pred_dtype).itemsize

    # Sublane-pad Q / K to multiples of 16 (bf16 sublane pairs).  Zero padding
    # => padded queries contribute nothing; padded class rows are exactly 0.
    Qp = _round_up(Q, 16)
    Kp = _round_up(K, 16)

    if tile_hw is None:
        tile_hw = _pick_tile_hw(HW, Cm, Qp, Kp,
                                return_mask_pred=return_mask_pred,
                                sem_bytes=sem_bytes, mp_bytes=mp_bytes)
    assert tile_hw % 128 == 0
    HWp = pl.cdiv(HW, tile_hw) * tile_hw
    n_hw = HWp // tile_hw

    # Small HW-invariant operands: pad/cast (cheap).
    if (Kp, Qp) != (K, Q):
        cls_prob_t = jnp.pad(cls_prob_t, ((0, 0), (0, Kp - K), (0, Qp - Q)))
    if Qp != Q:
        mask_embed = jnp.pad(mask_embed, ((0, 0), (0, Qp - Q), (0, 0)))
    cls_prob_t = cls_prob_t.astype(compute_dtype)
    mask_embed = mask_embed.astype(compute_dtype)
    # pixfeat is ideally already bf16 and HW-aligned (typical stride-4 ODISE
    # maps); only pad / cast when strictly necessary (extra HBM passes).
    if HWp != HW:
        pixfeat = jnp.pad(pixfeat, ((0, 0), (0, 0), (0, HWp - HW)))
    if pixfeat.dtype != compute_dtype:
        pixfeat = pixfeat.astype(compute_dtype)

    # Explicit VMEM limit: tile footprint + headroom, capped at 3/4 of the
    # generation's physical VMEM (≈48 MiB on v7x, 96 MiB on v5e/v6e).
    cap = _vmem_capacity_bytes()
    tile_bytes = _tile_footprint_bytes(tile_hw, Cm, Qp, Kp,
                                       return_mask_pred=return_mask_pred,
                                       sem_bytes=sem_bytes, mp_bytes=mp_bytes)
    vmem_limit = int(min(max(tile_bytes + (8 << 20), 16 << 20), cap * 3 // 4))

    in_specs = [
        pl.BlockSpec((pl.Squeezed(), Kp, Qp), lambda b, t: (b, 0, 0)),
        pl.BlockSpec((pl.Squeezed(), Qp, Cm), lambda b, t: (b, 0, 0)),
        pl.BlockSpec((pl.Squeezed(), Cm, tile_hw), lambda b, t: (b, 0, t)),
    ]
    sem_shape = jax.ShapeDtypeStruct((B, Kp, HWp), semseg_dtype)
    sem_spec = pl.BlockSpec((pl.Squeezed(), Kp, tile_hw), lambda b, t: (b, 0, t))

    if return_mask_pred:
        out_shape = (sem_shape,
                     jax.ShapeDtypeStruct((B, Qp, HWp), mask_pred_dtype))
        out_specs = (sem_spec,
                     pl.BlockSpec((pl.Squeezed(), Qp, tile_hw),
                                  lambda b, t: (b, 0, t)))
    else:
        out_shape = sem_shape
        out_specs = sem_spec

    outs = pl.pallas_call(
        _pano_tile_kernel,
        out_shape=out_shape,
        grid_spec=pl.GridSpec(grid=(B, n_hw), in_specs=in_specs,
                              out_specs=out_specs),
        compiler_params=pltpu.CompilerParams(
            dimension_semantics=("parallel", "parallel"),
            vmem_limit_bytes=vmem_limit),
    )(cls_prob_t, mask_embed, pixfeat)

    if return_mask_pred:
        semseg, mask_logits = outs
        return semseg, mask_logits
    return outs, None


# ----------------------------------------------------------------------------
# Minimal inner "model" (stand-in for the ODISE model the wrapper wraps).
# Deterministically initialized; feature extraction and the tiny HW-invariant
# heads are plain-JAX glue, the spatial hot path runs in the Pallas kernel.
# ----------------------------------------------------------------------------
class _SemSegHead:
    def __init__(self, num_classes):
        self.num_classes = num_classes


class _CategoryHead:
    def __init__(self, test_labels):
        self.test_labels = test_labels


class InnerModel:
    def __init__(self, key, cin=4, d=32, cm=32, q=8, train_num_classes=3,
                 tile_hw=None):
        ks = jax.random.split(key, 5)
        self.cin, self.d, self.cm, self.q = cin, d, cm, q
        self.tile_hw = tile_hw
        self.query_embed = jax.random.normal(ks[0], (q, d), jnp.float32) * 0.1
        self.w_pool = jax.random.normal(ks[1], (cin, d), jnp.float32) * 0.1
        self.w_pix = jax.random.normal(ks[2], (cin, cm), jnp.float32) * 0.1
        self.w_mask = jax.random.normal(ks[3], (d, cm), jnp.float32) * 0.1
        self._cls_key = ks[4]
        self.sem_seg_head = _SemSegHead(train_num_classes)
        self.train_labels = [["person"], ["dog"], ["cat"]]
        self.category_head = _CategoryHead([["person"], ["dog"], ["cat"]])
        self.device = None
        # wrapper-controlled flags / bookkeeping (as in the PyTorch module)
        self.semantic_on = True
        self.instance_on = True
        self.panoptic_on = True
        self.test_topk_per_image = 100
        self.metadata = None
        self.chunk_sizes_pyt = None
        self.chunk_start_idx_pyt = None
        self.category_overlapping_mask = None

    def _classifier_weight(self, num_classes):
        # deterministic classifier for (num_classes + 1 "no-object")
        return jax.random.normal(self._cls_key,
                                 (self.d, num_classes + 1), jnp.float32) * 0.1

    def _features(self, x):
        """HW-invariant query features + (B, Cm, HW) bf16 pixel features."""
        B, Cin, H, W = x.shape
        pooled = jnp.mean(x, axis=(2, 3))                              # (B, Cin)
        qfeat = self.query_embed[None] + (pooled @ self.w_pool)[:, None, :]
        # 1x1 "conv" pixel decoder emitted as (B, Cm, HW), HW lane-dense, and
        # cast to bf16 in the producer fusion (no separate HBM cast pass).
        pixfeat = jnp.einsum("bchw,cm->bmhw", x, self.w_pix,
                             preferred_element_type=jnp.float32)
        pixfeat = pixfeat.astype(jnp.bfloat16).reshape(B, self.cm, H * W)
        return qfeat, pixfeat

    def __call__(self, x):
        B, Cin, H, W = x.shape
        K = self.sem_seg_head.num_classes
        qfeat, pixfeat = self._features(x)

        # HW-invariant heads (tiny matmuls + softmax) hoisted out of the tiled
        # Pallas kernel so they run once per image, not per HW tile.
        wc = self._classifier_weight(K)                                # (D, K+1)
        cls_logits = jnp.einsum("bqd,dk->bqk", qfeat, wc)              # (B,Q,K+1)
        cls_prob = jax.nn.softmax(cls_logits, axis=-1)[..., :K]        # (B,Q,K)
        cls_prob_t = jnp.transpose(cls_prob, (0, 2, 1))                # (B,K,Q)
        mask_embed = jnp.einsum("bqd,dm->bqm", qfeat, self.w_mask)     # (B,Q,Cm)

        need_masks = self.instance_on or self.panoptic_on
        semseg, mask_logits = pano_semantic_inference(
            cls_prob_t, mask_embed, pixfeat,
            return_mask_pred=need_masks, tile_hw=self.tile_hw)

        # Outputs keep their class/query padding (padded rows are exactly zero
        # and must be ignored downstream); only the rare HW tail pad is trimmed
        # so the spatial reshape is valid.  This avoids extra full-tensor HBM
        # slice copies after the kernel.
        if semseg.shape[-1] != H * W:
            semseg = semseg[..., :H * W]
        results = {"sem_seg": semseg.reshape(B, -1, H, W),
                   "sem_seg_num_classes": K}
        if need_masks:
            if mask_logits.shape[-1] != H * W:
                mask_logits = mask_logits[..., :H * W]
            results["mask_pred"] = mask_logits.reshape(B, -1, H, W)
            results["mask_pred_num_queries"] = self.q
        # TODO(synk): panoptic merging / instance top-k NMS (argmax + connected
        # components over dynamic label sets) has no clean Pallas equivalent.
        return results


# ----------------------------------------------------------------------------
# OpenPanopticInference wrapper (JAX port of the PyTorch module).
# ----------------------------------------------------------------------------
class OpenPanopticInference:
    def __init__(self, model, labels, metadata=None, semantic_on=True,
                 instance_on=True, panoptic_on=True, test_topk_per_image=100):
        self.model = model
        self.metadata = metadata

        num_templates = [len(l) for l in labels]
        chunk_sizes = jnp.asarray(num_templates, dtype=jnp.int32)
        chunk_start_idx = [0]
        for i in range(len(num_templates) - 1):
            chunk_start_idx.append(chunk_start_idx[i] + num_templates[i])
        chunk_start_idx = jnp.asarray(chunk_start_idx, dtype=jnp.int32)

        self.model.semantic_on = semantic_on
        self.model.instance_on = instance_on
        self.model.panoptic_on = panoptic_on
        self.model.test_topk_per_image = test_topk_per_image
        self.model.metadata = self.metadata

        # category-overlapping mask (open-vocab vs training vocabulary)
        if hasattr(self.model, "category_head"):
            self.labels = self.model.category_head.test_labels
            self.model.category_head.test_labels = labels
            train_labels = {l for label in self.model.train_labels for l in label}
            category_overlapping_list = [
                not set(train_labels).isdisjoint(set(test_label))
                for test_label in self.model.category_head.test_labels]
            self.model.category_overlapping_mask = jnp.asarray(
                category_overlapping_list, dtype=jnp.int32)
        elif hasattr(self.model, "word_head"):
            self.labels = self.model.word_head.test_labels
            self.model.word_head.test_labels = labels
            train_labels = {l for label in self.model.train_labels for l in label}
            category_overlapping_list = [
                not set(train_labels).isdisjoint(set(test_label))
                for test_label in self.model.word_head.test_labels]
            self.model.category_overlapping_mask = jnp.asarray(
                category_overlapping_list, dtype=jnp.int32)

        self.chunk_sizes_pyt = self.model.chunk_sizes_pyt
        self.chunk_start_idx_pyt = self.model.chunk_start_idx_pyt
        self.model.chunk_sizes_pyt = chunk_sizes
        self.model.chunk_start_idx_pyt = chunk_start_idx

        self.num_classes = self.model.sem_seg_head.num_classes
        self.model.sem_seg_head.num_classes = len(labels)
        self.training = False

    def __call__(self, batched_inputs):
        assert not self.training
        results = self.model(batched_inputs)
        return results


# ----------------------------------------------------------------------------
# Reference (pure jnp, mirroring the kernel's bf16 operands / bf16 outputs).
# ----------------------------------------------------------------------------
def _reference(model, x, K):
    B, Cin, H, W = x.shape
    qfeat, pixfeat = model._features(x)            # pixfeat already bf16
    wc = model._classifier_weight(K)
    cls_logits = jnp.einsum("bqd,dk->bqk", qfeat, wc)
    cls_prob = jax.nn.softmax(cls_logits, axis=-1)[..., :K]
    mask_embed = jnp.einsum("bqd,dm->bqm", qfeat, model.w_mask)

    me_b = mask_embed.astype(jnp.bfloat16)
    cp_b = cls_prob.astype(jnp.bfloat16)
    mask_logits = jnp.einsum("bqm,bmp->bqp", me_b, pixfeat,
                             preferred_element_type=jnp.float32)      # (B,Q,HW)
    mask_prob = jax.nn.sigmoid(mask_logits).astype(jnp.bfloat16)
    semseg = jnp.einsum("bqk,bqp->bkp", cp_b, mask_prob,
                        preferred_element_type=jnp.float32)           # (B,K,HW)
    sem_out = semseg.astype(jnp.bfloat16).astype(jnp.float32)
    mp_out = mask_logits.astype(jnp.bfloat16).astype(jnp.float32)
    return sem_out.reshape(B, K, H, W), mp_out.reshape(B, -1, H, W)


if __name__ == "__main__":
    key = jax.random.PRNGKey(0)
    k_model, k_data = jax.random.split(key)

    # open-vocabulary test labels (lists of synonyms per class)
    labels = [
        ["person", "human"],
        ["car", "automobile", "vehicle"],
        ["tree", "plant"],
        ["sky"],
    ]

    # tile_hw=128 forces a multi-tile HW grid even at the toy 16x16 spatial
    # size; at real ODISE shapes tile_hw=None auto-picks 2K-8K wide tiles.
    inner = InnerModel(k_model, cin=4, d=32, cm=32, q=8, train_num_classes=3,
                       tile_hw=128)
    wrapper = OpenPanopticInference(inner, labels)

    x = jax.random.normal(k_data, (2, 4, 16, 16), jnp.float32)  # NCHW

    results = wrapper(x)
    sem_seg = jax.block_until_ready(results["sem_seg"])
    mask_pred = jax.block_until_ready(results["mask_pred"])

    K = len(labels)
    Q = inner.q
    ref_sem, ref_mask = _reference(inner, x, K)

    # Outputs are class/query padded to multiples of 16; padded rows are zero.
    Kp, Qp = sem_seg.shape[1], mask_pred.shape[1]
    assert sem_seg.shape == (2, Kp, 16, 16) and Kp >= K
    assert mask_pred.shape == (2, Qp, 16, 16) and Qp >= Q
    assert bool(jnp.all(sem_seg[:, K:] == 0.0))
    assert bool(jnp.all(mask_pred[:, Q:] == 0.0))
    assert jnp.allclose(sem_seg[:, :K].astype(jnp.float32), ref_sem,
                        atol=3e-2, rtol=3e-2)
    assert jnp.allclose(mask_pred[:, :Q].astype(jnp.float32), ref_mask,
                        atol=1e-2, rtol=1e-2)

    print("KERNEL_OK")
</pallas_src>

<mosaic_0001>
module attributes {stable_mosaic.version = 11 : i64} {
  func.func @_pano_tile_kernel(%arg0: i32, %arg1: i32, %arg2: memref<1x16x16xbf16, #tpu.memory_space<vmem>>, %arg3: memref<1x16x32xbf16, #tpu.memory_space<vmem>>, %arg4: memref<1x32x128xbf16, #tpu.memory_space<vmem>>, %arg5: memref<1x16x128xbf16, #tpu.memory_space<vmem>>, %arg6: memref<1x16x128xbf16, #tpu.memory_space<vmem>>) attributes {dimension_semantics = [#tpu.dimension_semantics<parallel>, #tpu.dimension_semantics<parallel>], iteration_bounds = array<i64: 2, 2>, scalar_prefetch = 0 : i64, scratch_operands = 0 : i64, tpu.core_type = #tpu.core_type<tc>, window_params = [{transform_indices = @transform_0, window_bounds = array<i64: 1, 16, 16>}, {transform_indices = @transform_1, window_bounds = array<i64: 1, 16, 32>}, {transform_indices = @transform_2, window_bounds = array<i64: 1, 32, 128>}, {transform_indices = @transform_3, window_bounds = array<i64: 1, 16, 128>}, {transform_indices = @transform_4, window_bounds = array<i64: 1, 16, 128>}]} {
    %c0 = arith.constant 0 : index
    %c0_0 = arith.constant 0 : index
    %c0_1 = arith.constant 0 : index
    %0 = vector.load %arg3[%c0, %c0_0, %c0_1] : memref<1x16x32xbf16, #tpu.memory_space<vmem>>, vector<1x16x32xbf16>
    %1 = vector.shape_cast %0 : vector<1x16x32xbf16> to vector<16x32xbf16>
    %c0_2 = arith.constant 0 : index
    %c0_3 = arith.constant 0 : index
    %c0_4 = arith.constant 0 : index
    %2 = vector.load %arg4[%c0_2, %c0_3, %c0_4] : memref<1x32x128xbf16, #tpu.memory_space<vmem>>, vector<1x32x128xbf16>
    %3 = vector.shape_cast %2 : vector<1x32x128xbf16> to vector<32x128xbf16>
    %cst = arith.constant dense<0.000000e+00> : vector<16x128xf32>
    %4 = tpu.matmul %1, %3, %cst {dimension_numbers = #tpu.dot_dimension_numbers<[1], [0], [0], [1], [0, 0, 1, 1], [], []>} : vector<16x32xbf16>, vector<32x128xbf16>, vector<16x128xf32> -> vector<16x128xf32>
    %5 = arith.negf %4 : vector<16x128xf32>
    %6 = math.exp %5 : vector<16x128xf32>
    %cst_5 = arith.constant 1.000000e+00 : f32
    %7 = vector.broadcast %cst_5 : f32 to vector<16x128xf32>
    %8 = arith.addf %7, %6 : vector<16x128xf32>
    %9 = arith.divf %7, %8 : vector<16x128xf32>
    %10 = arith.truncf %9 : vector<16x128xf32> to vector<16x128xbf16>
    %c0_6 = arith.constant 0 : index
    %c0_7 = arith.constant 0 : index
    %c0_8 = arith.constant 0 : index
    %11 = vector.load %arg2[%c0_6, %c0_7, %c0_8] : memref<1x16x16xbf16, #tpu.memory_space<vmem>>, vector<1x16x16xbf16>
    %12 = vector.shape_cast %11 : vector<1x16x16xbf16> to vector<16x16xbf16>
    %cst_9 = arith.constant dense<0.000000e+00> : vector<16x128xf32>
    %13 = tpu.matmul %12, %10, %cst_9 {dimension_numbers = #tpu.dot_dimension_numbers<[1], [0], [0], [1], [0, 0, 1, 1], [], []>} : vector<16x16xbf16>, vector<16x128xbf16>, vector<16x128xf32> -> vector<16x128xf32>
    %14 = arith.truncf %13 : vector<16x128xf32> to vector<16x128xbf16>
    %c0_10 = arith.constant 0 : index
    %c0_11 = arith.constant 0 : index
    %c0_12 = arith.constant 0 : index
    %15 = vector.load %arg5[%c0_10, %c0_11, %c0_12] : memref<1x16x128xbf16, #tpu.memory_space<vmem>>, vector<1x16x128xbf16>
    %16 = vector.shape_cast %15 : vector<1x16x128xbf16> to vector<16x128xbf16>
    %17 = vector.shape_cast %14 : vector<16x128xbf16> to vector<1x16x128xbf16>
    tpu.vector_store %arg5[%c0_10, %c0_11, %c0_12], %17 {strides = array<i32>} : memref<1x16x128xbf16, #tpu.memory_space<vmem>>, vector<1x16x128xbf16>,
    %18 = arith.truncf %4 : vector<16x128xf32> to vector<16x128xbf16>
    %c0_13 = arith.constant 0 : index
    %c0_14 = arith.constant 0 : index
    %c0_15 = arith.constant 0 : index
    %19 = vector.load %arg6[%c0_13, %c0_14, %c0_15] : memref<1x16x128xbf16, #tpu.memory_space<vmem>>, vector<1x16x128xbf16>
    %20 = vector.shape_cast %19 : vector<1x16x128xbf16> to vector<16x128xbf16>
    %21 = vector.shape_cast %18 : vector<16x128xbf16> to vector<1x16x128xbf16>
    tpu.vector_store %arg6[%c0_13, %c0_14, %c0_15], %21 {strides = array<i32>} : memref<1x16x128xbf16, #tpu.memory_space<vmem>>, vector<1x16x128xbf16>,
    return
  }
  func.func @transform_0(%arg0: i32, %arg1: i32) -> (i32, i32, i32) {
    %c0_i32 = arith.constant 0 : i32
    %c0_i32_0 = arith.constant 0 : i32
    %c0_i32_1 = arith.constant 0 : i32
    return %arg0, %c0_i32, %c0_i32_0 : i32, i32, i32
  }
  func.func @transform_1(%arg0: i32, %arg1: i32) -> (i32, i32, i32) {
    %c0_i32 = arith.constant 0 : i32
    %c0_i32_0 = arith.constant 0 : i32
    %c0_i32_1 = arith.constant 0 : i32
    return %arg0, %c0_i32, %c0_i32_0 : i32, i32, i32
  }
  func.func @transform_2(%arg0: i32, %arg1: i32) -> (i32, i32, i32) {
    %c0_i32 = arith.constant 0 : i32
    %c0_i32_0 = arith.constant 0 : i32
    return %arg0, %c0_i32, %arg1 : i32, i32, i32
  }
  func.func @transform_3(%arg0: i32, %arg1: i32) -> (i32, i32, i32) {
    %c0_i32 = arith.constant 0 : i32
    %c0_i32_0 = arith.constant 0 : i32
    return %arg0, %c0_i32, %arg1 : i32, i32, i32
  }
  func.func @transform_4(%arg0: i32, %arg1: i32) -> (i32, i32, i32) {
    %c0_i32 = arith.constant 0 : i32
    %c0_i32_0 = arith.constant 0 : i32
    return %arg0, %c0_i32, %arg1 : i32, i32, i32
  }
}

</mosaic_0001>

<bundles_post_ra>
// kernel: tpu_custom_call.1
= control target key start
LH: loop header
LB: loop body
LE: loop exit
PB: predicated region body
PF: predicated region fallthrough
CT: control target
= control target key end

     0   :  { %s1511_s0 = inlined_call_operand.hbm [shape: bf16[2,16,16], index: 0, kind: input, shape index: {}]   ;;  %s1512_s1 = inlined_call_operand.hbm [shape: bf16[2,16,32], index: 1, kind: input, shape index: {}]   ;;  %s1513_s2 = inlined_call_operand.hbm [shape: bf16[2,32,256], index: 2, kind: input, shape index: {}]   ;;  %s1514_s3 = inlined_call_operand.hbm [shape: bf16[2,16,256], index: 3, kind: output, shape index: {0}]   ;;  %s1515_s4 = inlined_call_operand.hbm [shape: bf16[2,16,256], index: 4, kind: output, shape index: {1}]  }
   0x1   :  { %1532 = sst [smem:[#allocation24_spill]] %s1511_s0 }
   0x2   :  { %1533 = sst [smem:[#allocation25_spill]] %s1512_s1 }
   0x3   :  { %1534 = sst [smem:[#allocation26_spill]] %s1514_s3 }
   0x4   :  { %1535 = sst [smem:[#allocation27_spill]] %s1515_s4 }
   0x5   :  { %10 = vsyncpa [#allocation3], 0 }
   0x6   :  { %12 = vsyncpa [#allocation3 + $0x1], 0 }
   0x7   :  { %13 = vsyncpa [#allocation6], 0 }
   0x8   :  { %15 = vsyncpa [#allocation6 + $0x1], 0 }
   0x9   :  { %16 = vsyncpa [#allocation4], 0 }
   0xa   :  { %18 = vsyncpa [#allocation4 + $0x1], 0 }
   0xb   :  { %19 = vsyncpa [#allocation10], 0 }
   0xc   :  { %21 = vsyncpa [#allocation10 + $0x1], 0  ;;  %s1172_s15 = smov 0   ;;  %s1174_s16 = smov 0  }
   0xd   :  { %s1176_s17 = smov 0   ;;  %s1178_s18 = smov 0  }
   0xe   :  { %s1180_s19 = smov 0   ;;  %s1182_s20 = smov 0  }
   0xf   :  { %s1184_s21 = smov 0   ;;  %s1186_s22 = smov 0  }
  0x10   :  { %s1188_s23 = smov 0   ;;  %s1190_s24 = smov 0  }
  0x11   :  { %s1192_s25 = smov 0  }
  0x12 LB: > { %1536 = sst [smem:[#allocation16_spill]] %s1092_s15  ;;  %s1226_s26 = sadd.s32 4294967295, %s1132_s25   ;;  %s1132_s25 = sphi %s1192_s25, %s27_s25   ;;  %s1128_s24 = sphi %s1190_s24, %s1582_s24   ;;  %s1124_s23 = sphi %s1188_s23, %s1581_s23   ;;  %s1120_s22 = sphi %s1186_s22, %s1580_s22   ;;  %s1116_s21 = sphi %s1184_s21, %s1579_s21   ;;  %s1112_s20 = sphi %s1182_s20, %s1578_s20   ;;  %s1108_s19 = sphi %s1180_s19, %s1577_s19   ;;  %s1104_s18 = sphi %s1178_s18, %s1576_s18   ;;  %s1100_s17 = sphi %s1176_s17, %s1575_s17   ;;  %s1096_s16 = sphi %s1174_s16, %s1574_s16   ;;  %s1092_s15 = sphi %s1172_s15, %s1572_s15  }
  0x13   : > { %1537 = sst [smem:[#allocation17_spill]] %s1096_s16  ;;  %p53_p0 = scmp.ne.s32.totalorder %s1112_s20, %s1108_s19 }
  0x14   : > { %1538 = sst [smem:[#allocation18_spill]] %s1116_s21  ;;  %p54_p1 = scmp.eq.s32.totalorder %s1132_s25, 0 }
  0x15   : > { %1539 = sst [smem:[#allocation19_spill]] %s1120_s22  ;;  %p59_p2 = scmp.ne.s32.totalorder %s1108_s19, %s1104_s18 }
  0x16   : > { %p60_p3 = scmp.eq.s32.totalorder %s1226_s26, 0  ;;  %p139_p4 = scmp.eq.s32.totalorder %s1226_s26, 3 }
  0x17   : > { %p55_p5 = por %p54_p1, %p53_p0  ;;  %p1517_p7 = scmp.lt.s32.totalorder %s1132_s25, 4 }
  0x18   : > { %p1240_p6 = por %p60_p3, %p59_p2  ;;  %s1516_s30 = sand.u32 1, %s1112_s20  }
  0x19   : > { %s718_s5 = sshll.u32 %s1128_s24, 7  ;;  %s1249_s6 = sshll.u32 %s1516_s30, 3 }
  0x1a   : > { %p1253_p8 = pnand %p1517_p7, %p55_p5  ;;  %s214_s8 = sand.u32 1, %s1132_s25  }
  0x1b   : > { %s1542_s1 = sld [smem:[#allocation25_spill]]  ;;  %s218_s12 = scalar_lea.vmem [#allocation5], %s1249_s6 }
  0x1c   : > { %s225_s13 = sshll.u32 %s218_s12, 4  ;;  %p692_p9 = scmp.ge.s32.totalorder %s1132_s25, 1  ;;  %s226_s13 = int_to_ptr.vmem [resolvable:$true] %s225_s13 }
  0x1d   : > { %s1265_s14 = scalar_lea.sflag [#allocation6], %s214_s8  ;;  %p892_p10 = pneg %p1253_p8 }
  0x1e   : > { %s903_s18 = scalar_lea.vmem %s226_s13, 128  ;;  %s1134_s28 = smov [#allocation5]  }
  0x1f   : > { %p904_p11 = scmp.ne.s32.totalorder %s226_s13, %s903_s18  ;;  %s908_s27 = sshll.u32 %s1134_s28, 4  ;;  %s909_s27 = int_to_ptr.vmem [resolvable:$false] %s908_s27 }
  0x20   : > { %s910_s30 = scalar_lea.vmem %s909_s27, 256  ;;  %p911_p0 = scmp.lt.s32.totalorder %s226_s13, %s909_s27 }
  0x21   : > { %s224_s11 = scalar_lea.hbm %s1542_s1, %s718_s5  ;;  %p906_p12 = pnand %p904_p11, %p892_p10 }
  0x22   : > { %p912_p2 = scmp.lt.s32.totalorder %s910_s30, %s903_s18 }
  0x23   : > { %p907_p13 = pneg %p906_p12 }
  0x24   : > { %p913_p5 = por %p912_p2, %p911_p0 }
  0x26   : > { %p914_p7 = pnand %p913_p5, %p907_p13 }
  0x28   : > { %917 = shalt.err (!%p914_p7)
}
  0x29   : > { %s1520_s9 = smov 64   ;;  %s1522_s8 = smov 4  }
  0x2a   : > { %769 = dma.hbm_to_vmem [thread:$0]  (!%p1253_p8), %s224_s11, 128, %s226_s13, %s1265_s14, %s1520_s9, %s1520_s9, %s1522_s8  }
  0x2b   : > { %p255_p11 = scmp.lt.s32.totalorder %s1132_s25, 5  ;;  %s1544_s0 = sld [smem:[#allocation24_spill]] }
  0x2c   : > { %s197_s12 = scalar_lea.vmem [#allocation2], %s1249_s6  ;;  %s1545_s1 = sand.u32 1, %s1112_s20  }
  0x2d   : > { %p1281_p12 = pnand %p692_p9, %p255_p11  ;;  %s204_s18 = sshll.u32 %s197_s12, 4  ;;  %s205_s18 = int_to_ptr.vmem [resolvable:$true] %s204_s18 }
  0x2e   : > { %s194_s3 = scalar_lea.sflag [#allocation3], %s1545_s1  ;;  %s931_s4 = scalar_lea.vmem %s205_s18, 128 }
  0x2f   : > { %p932_p7 = scmp.ne.s32.totalorder %s205_s18, %s931_s4  ;;  %s1137_s11 = smov [#allocation2]  }
  0x30   : > { %s936_s13 = sshll.u32 %s1137_s11, 4  ;;  %s937_s13 = int_to_ptr.vmem [resolvable:$false] %s936_s13 }
  0x31   : > { %s203_s10 = scalar_lea.hbm %s1544_s0, %s718_s5  ;;  %p934_p13 = pnand %p932_p7, %p892_p10 }
  0x32   : > { %s938_s9 = scalar_lea.vmem %s937_s13, 256  ;;  %p939_p9 = scmp.lt.s32.totalorder %s205_s18, %s937_s13 }
  0x33   : > { %p935_p0 = pneg %p934_p13  ;;  %p940_p2 = scmp.lt.s32.totalorder %s938_s9, %s931_s4 }
  0x35   : > { %p941_p5 = por %p940_p2, %p939_p9 }
  0x37   : > { %p942_p11 = pnand %p941_p5, %p935_p0 }
  0x39   : > { %945 = shalt.err (!%p942_p11)
}
  0x3a   : > { %s1546_s5 = smov 64   ;;  %s680_s1 = sadd.s32 4294967294, %s1132_s25  }
  0x3b   : > { %766 = dma.hbm_to_vmem [thread:$0]  (!%p1253_p8), %s203_s10, 128, %s205_s18, %s194_s3, %s1546_s5, %s1546_s5, %s1522_s8  }
  0x3c   : > { %s36_s4 = sadd.s32 1, %s1124_s23  ;;  %s100_s6 = sadd.s32 1, %s1100_s17 }
  0x3d   : > { %p37_p10 = scmp.ge.s32.totalorder %s36_s4, 2  ;;  %p107_p7 = scmp.ne.s32.totalorder %s1100_s17, %s1096_s16 }
  0x3e   : > { %p113_p13 = scmp.ne.s32.totalorder %s1096_s16, %s1092_s15  ;;  %p145_p0 = scmp.eq.s32.totalorder %s680_s1, 3 }
  0x3f   : > { %s1584_s4 = smov (%p37_p10, %s36_s4), 0  ;;  %s1548_s7 = sadd.s32 1, %s1128_s24 }
  0x40   : > { %1547 = sst [smem:[#allocation20_spill]] %s1584_s4  ;;  %s1586_s7 = smov (!%p37_p10, %s1548_s7), %s1128_s24 }
  0x41   : > { %s96_s9 = ssub.s32 %s1124_s23, %s1584_s4  ;;  %p1317_p8 = por %p107_p7, %p54_p1 }
  0x42   : > { %p41_p9 = scmp.ge.s32.totalorder %s1586_s7, 2  ;;  %p1323_p2 = por %p113_p13, %p60_p3 }
  0x43   : > { %p1329_p5 = por %p139_p4, %p107_p7  ;;  %p1333_p11 = por %p145_p0, %p113_p13 }
  0x44   : > { %s1550_s28 = scalar_select %p1323_p2, 1, 0 }
  0x45   : > { %s1552_s30 = scalar_select %p1329_p5, 1, 0 }
  0x46   : > { %1551 = sst [smem:[#allocation21_spill]] %s1550_s28  ;;  %s1588_s7 = smov (%p41_p9, %s1586_s7), 0 }
  0x47   : > { %1553 = sst [smem:[#allocation22_spill]] %s1552_s30  ;;  %s237_s12 = sand.u32 1, %s1100_s17  }
  0x48   : > { %s1554_s10 = scalar_select %p1333_p11, 1, 0 }
  0x49   : > { %s690_s18 = sshll.u32 %s1128_s24, 3  ;;  %s43_s11 = ssub.s32 %s1128_s24, %s1588_s7 }
  0x4a   : > { %1555 = sst [smem:[#allocation23_spill]] %s1554_s10  ;;  %s689_s13 = sshll.u32 %s237_s12, 4 }
  0x4b   : > { %p44_p1 = scmp.eq.s32.totalorder %s43_s11, 0  ;;  %s97_s1 = sor.u32 %s96_s9, %s43_s11 }
  0x4c   : > { %p98_p3 = scmp.eq.s32.totalorder %s97_s1, 0  ;;  %s1556_s8 = sadd.s32 1, %s1112_s20 }
  0x4d   : > { %s1346_s0 = scalar_select %p44_p1, %s1112_s20, %s1556_s8  }
  0x4e   : > { %s1349_s4 = scalar_select %p98_p3, %s1100_s17, %s100_s6  }
  0x4f   : > { %s244_s15 = sadd.s32 %s1124_s23, %s690_s18  ;;  %s239_s30 = scalar_lea.vmem [#allocation7], %s689_s13 }
  0x50   : > { %s247_s10 = sshll.u32 %s239_s30, 4  ;;  %s691_s21 = sshll.u32 %s244_s15, 6  ;;  %s248_s10 = int_to_ptr.vmem [resolvable:$true] %s247_s10 }
  0x51   : > { %s246_s16 = scalar_lea.hbm %s1513_s2, %s691_s21  ;;  %p1557_p4 = scmp.lt.s32.totalorder %s1132_s25, 4 }
  0x52   : > { %s959_s8 = scalar_lea.vmem %s248_s10, 256  ;;  %s1138_s6 = smov [#allocation7]  }
  0x53   : > { %p1359_p10 = pnand %p1557_p4, %p1317_p8  ;;  %p960_p13 = scmp.ne.s32.totalorder %s248_s10, %s959_s8 }
  0x54   : > { %s964_s15 = sshll.u32 %s1138_s6, 4  ;;  %s965_s15 = int_to_ptr.vmem [resolvable:$false] %s964_s15 }
  0x55   : > { %p948_p7 = pneg %p1359_p10  ;;  %s966_s9 = scalar_lea.vmem %s965_s15, 512 }
  0x56   : > { %p967_p1 = scmp.lt.s32.totalorder %s248_s10, %s965_s15  ;;  %p968_p3 = scmp.lt.s32.totalorder %s966_s9, %s959_s8 }
  0x57   : > { %p962_p0 = pnand %p960_p13, %p948_p7 }
  0x58   : > { %p969_p11 = por %p968_p3, %p967_p1 }
  0x59   : > { %p963_p9 = pneg %p962_p0 }
  0x5b   : > { %p970_p5 = pnand %p969_p11, %p963_p9 }
  0x5d   : > { %973 = shalt.err (!%p970_p5)
}
  0x5e   : > { %s1139_s21 = smov 128   ;;  %s1559_s22 = smov 4  }
  0x5f   : > { %772 = dma.hbm_to_vmem [thread:$0]  (!%p1359_p10), %s246_s16, 256, %s248_s10, %s1265_s14, %s1139_s21, %s1546_s5, %s1559_s22  }
  0x60   : > { %259 = sbr.rel (%p1281_p12) target bundleno = 571 (0x23b), region = 32  ;;  %s261_s3 = sand.u32 (!%p1281_p12), 1, %s1108_s19  }
  0x61   : > { %s1373_s28 = sshll.u32 (!%p1281_p12), %s261_s3, 3  ;;  %s262_s30 = scalar_lea.sflag (!%p1281_p12), [#allocation3], %s261_s3 }
  0x62   : > { %s265_s18 = scalar_lea.vmem (!%p1281_p12), [#allocation2], %s1373_s28 }
  0x65   : > { %1071 = dma.done.wait (%p1240_p6), %s262_s30, 128  }
  0x66   : > { %1073 = vsyncadd (%p1240_p6), %s262_s30, 4294967168  ;;  %s270_s16 = sand.u32 1, %s1226_s26   ;;  %s274_s27 = scalar_lea.vmem [#allocation5], %s1373_s28 }
  0x67   : > { %s271_s14 = scalar_lea.sflag [#allocation6], %s270_s16 }
  0x68   : > { %1075 = dma.done.wait (%p1240_p6), %s271_s14, 128  }
  0x69   : > { %1077 = vsyncadd (%p1240_p6), %s271_s14, 4294967168  ;;  %s1560_s5 = sld [smem:[#allocation17_spill]] }
  0x6f   : > { %s1387_s11 = sand.u32 1, %s1560_s5  }
  0x70   : > { %s695_s13 = sshll.u32 %s1387_s11, 4 }
  0x71   : > { %s283_s1 = scalar_lea.vmem [#allocation7], %s695_s13 }
  0x72   : > { %1079 = dma.done.wait (%p1323_p2), %s271_s14, 256  }
  0x73   : > { %1081 = vsyncadd (%p1323_p2), %s271_s14, 4294967040  ;;  %v1140_v0 = vmov 0.0   ;;  %vm1141_vm0 = vmmov 0   ;;  %v878_v1 = vld [vmem:[%s283_s1 + $0x8] sm:$0xff]   ;;  %v879_v2 = vld [vmem:[%s283_s1] sm:$0xff]   ;;  %vm347_vm1 = vcmask 261120  }
  0x74   : > { %739 = vmatprep.subr.bf16.mxu0 %v1140_v0  ;;  %743 = vmatprep.mubr.msk.bf16.mxu0 %vm1141_vm0, %v1140_v0  ;;  %v880_v3 = vld [vmem:[%s274_s27] sm:$0xff]   ;;  %s696_s26 = sshll.u32 %s1387_s11, 3  ;;  %s1562_s29 = sld [smem:[#allocation19_spill]]  ;;  %v881_v18 = vld [vmem:[%s265_s18] sm:$0xff]   ;;  %vm412_vm2 = vcmask 130048  }
  0x75   : > { %747 = vmatprep.subr.bf16.mxu1 %v1140_v0  ;;  %749 = vmatprep.mubr.msk.bf16.mxu1 %vm1141_vm0, %v1140_v0  ;;  %s322_s12 = scalar_lea.vmem [#allocation9], %s696_s26  ;;  %s1563_s8 = sld [smem:[#allocation18_spill]] }
  0x76   : > { %740 = vmatpush3.bf16.msra.mxu0 %v878_v1  ;;  %s1564_s6 = sld [smem:[#allocation22_spill]]  ;;  %s514_s9 = sshll.u32 %s322_s12, 4  ;;  %s1404_s9 = int_to_ptr.vmem [resolvable:$true] %s514_s9 }
  0x77   : > { %741 = vmatprep.subr.bf16.mxu0 %v1140_v0  ;;  %s1565_s16 = sld [smem:[#allocation27_spill]]  ;;  %s483_s18 = scalar_lea.sflag [#allocation10], %s1387_s11 }
  0x78   : > { %s974_s27 = scalar_lea.vmem %s1404_s9, 128  ;;  %s1142_s5 = smov [#allocation9]  }
  0x79   : > { %p975_p6 = scmp.ne.s32.totalorder %s1404_s9, %s974_s27  ;;  %s978_s10 = sshll.u32 %s1142_s5, 4  ;;  %s979_s10 = int_to_ptr.vmem [resolvable:$false] %s978_s10 }
  0x7a   : > { %742 = vmatpush3.bf16.msra.mxu0 %v879_v2  ;;  %s712_s15 = sshll.u32 %s1562_s29, 2  ;;  %s980_s13 = scalar_lea.vmem %s979_s10, 256 }
  0x7b   : > { %s1401_s21 = sadd.s32 %s1563_s8, %s712_s15  ;;  %p981_p5 = scmp.lt.s32.totalorder %s1404_s9, %s979_s10 }
  0x7c   : > { %s713_s22 = sshll.u32 %s1401_s21, 6  ;;  %p1567_p12 = scmp.ne.s32.totalorder %s1564_s6, 0 }
  0x7d   : > { %744 = vmatmul.mubr.msk.bf16.vlgmr.msra.gmra.mxu0 %vm347_vm1, %v880_v3  ;;  %s1566_s14 = smov %s1565_s16  ;;  %s1411_s28 = scalar_lea.hbm %s1565_s16, %s713_s22 }
  0x7e   : > { %p976_p8 = pnand %p975_p6, %p1567_p12  ;;  %p982_p11 = scmp.lt.s32.totalorder %s980_s13, %s974_s27 }
  0x80   : > { %p977_p2 = pneg %p976_p8  ;;  %p983_p4 = por %p982_p11, %p981_p5 }
  0x82   : > { %p984_p10 = pnand %p983_p4, %p977_p2 }
 0x13d   : > { %v385_v4 = vpop.f32.mrf.mxu0 }
 0x13e   : > { %v702_v5 = vmul.f32 -1.442695, %v385_v4 }
 0x13f   : > { %v745_v6 = vpop.f32.mrf.mxu0 }
 0x140   : > { %882 = vpow2.f32 %v702_v5 }
 0x141   : > { %v388_v7 = vpop.f32.mrf.mxu0 }
 0x142   : > { %v703_v8 = vmul.f32 -1.442695, %v388_v7  ;;  %v732_v9 = vpack.c.bf16 %v388_v7, %v385_v4 }
 0x143   : > { %v746_v10 = vpop.f32.mrf.mxu0 }
 0x144   : > { %884 = vpow2.f32 %v703_v8  ;;  %733 = vst [vmem:[%s322_s12] sm:$0xff] %v732_v9  }
 0x14d   : > { %v883_v11 = vpop.eup %882 }
 0x14e   : > { %v398_v12 = vadd.f32 1.0, %v883_v11 }
 0x150   : > { %886 = vrcp.f32 %v398_v12 }
 0x151   : > { %v885_v13 = vpop.eup %884 }
 0x152   : > { %v399_v14 = vadd.f32 1.0, %v885_v13 }
 0x154   : > { %888 = vrcp.f32 %v399_v14 }
 0x15d   : > { %v887_v15 = vpop.eup %886 }
 0x161   : > { %v889_v16 = vpop.eup %888 }
 0x162   : > { %v404_v17 = vpack.c.bf16 %v889_v16, %v887_v15 }
 0x164   : > { %748 = vmatpush3.bf16.msra.mxu1 %v404_v17 }
 0x167   : > { %750 = vmatmul.mubr.msk.bf16.vlgmr.msra.gmra.mxu1 %vm412_vm2, %v881_v18 }
 0x168   : > { %987 = shalt.err (!%p984_p10)
}
 0x169   : > { %s988_s1 = scalar_lea.hbm %s1411_s28, 128  ;;  %s992_s8 = scalar_lea.hbm %s1566_s14, 512 }
 0x16a   : > { %p989_p7 = scmp.ne.s32.totalorder %s1411_s28, %s988_s1  ;;  %p993_p9 = scmp.lt.s32.totalorder %s1411_s28, %s1566_s14 }
 0x16b   : > { %p994_p1 = scmp.lt.s32.totalorder %s992_s8, %s988_s1 }
 0x16c   : > { %p990_p13 = pnand %p989_p7, %p1567_p12 }
 0x16d   : > { %p995_p3 = por %p994_p1, %p993_p9 }
 0x16e   : > { %p991_p0 = pneg %p990_p13 }
 0x170   : > { %p996_p6 = pnand %p995_p3, %p991_p0 }
 0x172   : > { %999 = shalt.err (!%p996_p6)
}
 0x173   : > { %s1143_s30 = smov 64   ;;  %s1144_s16 = smov 128  }
 0x174   : > { %s1145_s27 = smov 4   ;;  %s315_s5 = scalar_lea.vmem [#allocation8], %s696_s26 }
 0x175   : > { %760 = dma.vmem_to_hbm [thread:$0]  (%p1567_p12), %s1404_s9, 128, %s1411_s28, %s483_s18, %s1143_s30, %s1144_s16, %s1145_s27  }
 0x176   : > { %s497_s10 = sshll.u32 %s315_s5, 4  ;;  %s1568_s29 = sld [smem:[#allocation26_spill]]  ;;  %s1441_s10 = int_to_ptr.vmem [resolvable:$true] %s497_s10 }
 0x177   : > { %s478_s9 = scalar_lea.sflag [#allocation4], %s1387_s11  ;;  %s1000_s28 = scalar_lea.vmem %s1441_s10, 128 }
 0x178   : > { %p1001_p8 = scmp.ne.s32.totalorder %s1441_s10, %s1000_s28  ;;  %s1146_s26 = smov [#allocation8]  }
 0x179   : > { %s1004_s18 = sshll.u32 %s1146_s26, 4  ;;  %s1005_s18 = int_to_ptr.vmem [resolvable:$false] %s1004_s18 }
 0x17a   : > { %p1002_p2 = pnand %p1001_p8, %p1567_p12  ;;  %s1006_s8 = scalar_lea.vmem %s1005_s18, 256 }
 0x17b   : > { %p1007_p11 = scmp.lt.s32.totalorder %s1441_s10, %s1005_s18  ;;  %p1008_p4 = scmp.lt.s32.totalorder %s1006_s8, %s1000_s28 }
 0x17c   : > { %s1448_s12 = scalar_lea.hbm %s1568_s29, %s713_s22  ;;  %p1003_p5 = pneg %p1002_p2 }
 0x17d   : > { %p1009_p10 = por %p1008_p4, %p1007_p11 }
 0x17f   : > { %p1010_p7 = pnand %p1009_p10, %p1003_p5 }
 0x227   : > { %v450_v19 = vpop.f32.mrf.mxu1 }
 0x229   : > { %v751_v20 = vpop.f32.mrf.mxu1 }
 0x22b   : > { %v453_v21 = vpop.f32.mrf.mxu1 }
 0x22c   : > { %v727_v22 = vpack.c.bf16 %v453_v21, %v450_v19 }
 0x22d   : > { %v752_v23 = vpop.f32.mrf.mxu1 }
 0x22e   : > { %728 = vst [vmem:[%s315_s5] sm:$0xff] %v727_v22  }
 0x22f   : > { %1013 = shalt.err (!%p1010_p7)
}
 0x230   : > { %s1014_s21 = scalar_lea.hbm %s1448_s12, 128  ;;  %s1018_s15 = scalar_lea.hbm %s1568_s29, 512 }
 0x231   : > { %p1015_p13 = scmp.ne.s32.totalorder %s1448_s12, %s1014_s21  ;;  %p1019_p1 = scmp.lt.s32.totalorder %s1448_s12, %s1568_s29 }
 0x232   : > { %p1020_p3 = scmp.lt.s32.totalorder %s1018_s15, %s1014_s21 }
 0x233   : > { %p1016_p0 = pnand %p1015_p13, %p1567_p12 }
 0x234   : > { %p1021_p6 = por %p1020_p3, %p1019_p1 }
 0x235   : > { %p1017_p9 = pneg %p1016_p0 }
 0x237   : > { %p1022_p8 = pnand %p1021_p6, %p1017_p9 }
 0x239   : > { %1025 = shalt.err (!%p1022_p8)
}
 0x23a   : > { %759 = dma.vmem_to_hbm [thread:$0]  (%p1567_p12), %s1441_s10, 128, %s1448_s12, %s478_s9, %s1143_s30, %s1144_s16, %s1145_s27  }
 0x23b PF: > { %s1569_s13 = sld [smem:[#allocation16_spill]]  ;;  %p781_p2 = scmp.ge.s32.totalorder %s1132_s25, 2 }
 0x23c   : > { %s1570_s1 = sld [smem:[#allocation23_spill]] }
 0x241   : > { %s529_s28 = sand.u32 1, %s1569_s13  }
 0x242   : > { %p1571_p5 = scmp.ne.s32.totalorder %s1570_s1, 0  ;;  %s530_s26 = scalar_lea.sflag [#allocation4], %s529_s28 }
 0x244   : > { %p774_p11 = pnand %p781_p2, %p1571_p5 }
 0x246   : > { %p775_p4 = pneg %p774_p11 }
 0x248   : > { %1083 = dma.done.wait (%p775_p4), %s530_s26, 128  }
 0x249   : > { %1085 = vsyncadd (%p775_p4), %s530_s26, 4294967168  ;;  %s539_s18 = scalar_lea.sflag [#allocation10], %s529_s28 }
 0x24a   : > { %1087 = dma.done.wait (%p775_p4), %s539_s18, 128  }
 0x24b   : > { %1089 = vsyncadd (%p775_p4), %s539_s18, 4294967168  ;;  %s27_s25 = sadd.s32 1, %s1132_s25   ;;  %s1572_s15 = sld [smem:[#allocation17_spill]] }
 0x24c   : > { %p24_p10 = scmp.ge.s32.totalorder %s27_s25, 6   ;;  %s1573_s6 = sld [smem:[#allocation20_spill]] }
 0x24d   : > { %s1574_s16 = smov %s1100_s17  ;;  %s1575_s17 = smov %s1349_s4 }
 0x24e   : > { %s1576_s18 = smov %s1108_s19  ;;  %s1577_s19 = smov %s1112_s20 }
 0x24f   : > { %s1578_s20 = smov %s1346_s0  ;;  %s1579_s21 = smov %s1124_s23 }
 0x250   : > { %s1580_s22 = smov %s1128_s24  ;;  %s1582_s24 = smov %s1588_s7 }
 0x251   :  { %26 = sbr.rel (!%p24_p10) target bundleno = 18 (0x12), region = 118 }
 0x252   : > { %s1581_s23 = smov %s1573_s6 }
 0x256   :  { %544 = vsyncpa [#allocation3], 1 }
 0x257   :  { %546 = vsyncpa [#allocation3 + $0x1], 1 }
 0x258   :  { %547 = vsyncpa [#allocation6], 1 }
 0x259   :  { %549 = vsyncpa [#allocation6 + $0x1], 1 }
 0x25a   :  { %550 = vsyncpa [#allocation4], 1 }
 0x25b   :  { %552 = vsyncpa [#allocation4 + $0x1], 1 }
 0x25c   :  { %553 = vsyncpa [#allocation10], 1 }
 0x25d   :  { %555 = vsyncpa [#allocation10 + $0x1], 1 }

</bundles_post_ra>
